<compile_context>
chip_gen: v7x
topology: tpu7x:2x2x1
jax: 0.10.0
libtpu: 0.0.40
codegen_flags: <defaults>
</compile_context>

<pallas_src>
import jax
import jax.numpy as jnp
from jax.experimental import pallas as pl
from jax.experimental.pallas import tpu as pltpu


def _scaler_kernel(x_ref, w_ref, b_ref, o_ref):
    """One batch element: 1x1 conv on the small grid, then replicate s*s times.

    x_ref: (1, C, H*W)         input, lane-dense (H*W multiple of 128)
    w_ref: (Cout, C)           1x1-conv weight (VMEM-resident across the grid)
    b_ref: (Cout, 1)           1x1-conv bias
    o_ref: (1, s*s, Cout, H*W) s*s identical copies of the conv output
    """
    x = x_ref[0]                                   # (C, H*W)
    w = w_ref[...]                                 # (Cout, C)
    b = b_ref[...]                                 # (Cout, 1)

    # Minimal conv matmul: Cout x C x (H*W) MACs, f32 accumulation on the MXU.
    # Bias added once, before replication.
    y = jnp.dot(w, x, preferred_element_type=jnp.float32) + b   # (Cout, H*W)

    # Nearest upsample == duplicate each value s*s times. Duplication along a
    # leading (non sublane/lane) axis is a trivial tile copy; the lane dim of
    # the store stays H*W-dense (multiple of 128) -> unmasked vst.
    o_ref[0] = jnp.broadcast_to(y[None], o_ref.shape[1:]).astype(o_ref.dtype)


def scaler_forward(x, weight, bias, *, scale=2):
    """x: (N, C, H, W), weight: (Cout, C), bias: (Cout,) -> (N, Cout, sH, sW).

    Equivalent to: nearest-upsample by `scale`, then 1x1 conv (weight, bias).
    """
    N, C, H, W = x.shape
    Cout = weight.shape[0]
    s = scale
    s2 = s * s
    HW = H * W

    x2 = x.reshape(N, C, HW)            # contiguous reshape, no data movement
    bias2d = bias.reshape(Cout, 1)

    out4 = pl.pallas_call(
        _scaler_kernel,
        out_shape=jax.ShapeDtypeStruct((N, s2, Cout, HW), x.dtype),
        grid_spec=pltpu.PrefetchScalarGridSpec(
            num_scalar_prefetch=0,
            grid=(N,),
            in_specs=[
                pl.BlockSpec((1, C, HW), lambda n: (n, 0, 0)),
                pl.BlockSpec((Cout, C), lambda n: (0, 0)),   # grid-invariant
                pl.BlockSpec((Cout, 1), lambda n: (0, 0)),   # grid-invariant
            ],
            out_specs=pl.BlockSpec((1, s2, Cout, HW), lambda n: (n, 0, 0, 0)),
        ),
        compiler_params=pltpu.CompilerParams(
            dimension_semantics=("parallel",)),   # batch over v7x's 2 TCs
    )(x2, weight, bias2d)

    # Layout plumbing only (no compute): out4[n, a*s+b, o, h*W+w] = y[n,o,h,w]
    #   -> out[n, o, h*s+a, w*s+b] = y[n, o, h, w]   (nearest upsample of conv)
    out = (out4.reshape(N, s, s, Cout, H, W)
               .transpose(0, 3, 4, 1, 5, 2)
               .reshape(N, Cout, H * s, W * s))
    return out


if __name__ == "__main__":
    key = jax.random.PRNGKey(0)
    kx, kw, kb = jax.random.split(key, 3)

    N, C, H, W = 2, 4, 16, 16
    Cout, scale = 8, 2

    x = jax.random.normal(kx, (N, C, H, W), dtype=jnp.float32)
    weight = 0.1 * jax.random.normal(kw, (Cout, C), dtype=jnp.float32)
    bias = jax.random.normal(kb, (Cout,), dtype=jnp.float32)

    out = scaler_forward(x, weight, bias, scale=scale)
    out = jax.block_until_ready(out)

    # Pure-JAX reference: nearest upsample (PyTorch 'nearest') then 1x1 conv.
    up = jnp.repeat(jnp.repeat(x, scale, axis=2), scale, axis=3)
    ref = jnp.einsum("oc,nchw->nohw", weight, up) + bias[None, :, None, None]

    assert out.shape == (N, Cout, H * scale, W * scale), out.shape
    assert jnp.allclose(out, ref, atol=1e-4, rtol=1e-4), float(
        jnp.max(jnp.abs(out - ref)))
    print("KERNEL_OK")
</pallas_src>

<mosaic_0001>
module attributes {stable_mosaic.version = 11 : i64} {
  func.func @_scaler_kernel(%arg0: i32, %arg1: memref<1x4x256xf32, #tpu.memory_space<vmem>>, %arg2: memref<8x4xf32, #tpu.memory_space<vmem>>, %arg3: memref<8x1xf32, #tpu.memory_space<vmem>>, %arg4: memref<1x4x8x256xf32, #tpu.memory_space<vmem>>) attributes {dimension_semantics = [#tpu.dimension_semantics<parallel>], iteration_bounds = array<i64: 2>, scalar_prefetch = 0 : i64, scratch_operands = 0 : i64, tpu.core_type = #tpu.core_type<tc>, window_params = [{transform_indices = @transform_0, window_bounds = array<i64: 1, 4, 256>}, {pipeline_mode = #tpu.pipeline_mode<synchronous>, transform_indices = @transform_1, window_bounds = array<i64: 8, 4>}, {pipeline_mode = #tpu.pipeline_mode<synchronous>, transform_indices = @transform_2, window_bounds = array<i64: 8, 1>}, {transform_indices = @transform_3, window_bounds = array<i64: 1, 4, 8, 256>}]} {
    %c0 = arith.constant 0 : index
    %c0_0 = arith.constant 0 : index
    %c0_1 = arith.constant 0 : index
    %0 = vector.load %arg1[%c0, %c0_0, %c0_1] : memref<1x4x256xf32, #tpu.memory_space<vmem>>, vector<1x4x256xf32>
    %1 = vector.shape_cast %0 : vector<1x4x256xf32> to vector<4x256xf32>
    %c0_2 = arith.constant 0 : index
    %c0_3 = arith.constant 0 : index
    %2 = vector.load %arg2[%c0_2, %c0_3] : memref<8x4xf32, #tpu.memory_space<vmem>>, vector<8x4xf32>
    %c0_4 = arith.constant 0 : index
    %c0_5 = arith.constant 0 : index
    %3 = vector.load %arg3[%c0_4, %c0_5] : memref<8x1xf32, #tpu.memory_space<vmem>>, vector<8x1xf32>
    %cst = arith.constant dense<0.000000e+00> : vector<8x256xf32>
    %4 = tpu.matmul %2, %1, %cst {dimension_numbers = #tpu.dot_dimension_numbers<[1], [0], [0], [1], [0, 0, 1, 1], [], []>} : vector<8x4xf32>, vector<4x256xf32>, vector<8x256xf32> -> vector<8x256xf32>
    %5 = vector.broadcast %3 : vector<8x1xf32> to vector<8x256xf32>
    %6 = arith.addf %4, %5 : vector<8x256xf32>
    %7 = vector.shape_cast %6 : vector<8x256xf32> to vector<1x8x256xf32>
    %8 = vector.shape_cast %7 : vector<1x8x256xf32> to vector<1x8x256xf32>
    %9 = vector.broadcast %8 : vector<1x8x256xf32> to vector<4x8x256xf32>
    %c0_6 = arith.constant 0 : index
    %c0_7 = arith.constant 0 : index
    %c0_8 = arith.constant 0 : index
    %c0_9 = arith.constant 0 : index
    %10 = vector.load %arg4[%c0_6, %c0_7, %c0_8, %c0_9] : memref<1x4x8x256xf32, #tpu.memory_space<vmem>>, vector<1x4x8x256xf32>
    %11 = vector.shape_cast %10 : vector<1x4x8x256xf32> to vector<4x8x256xf32>
    %12 = vector.shape_cast %9 : vector<4x8x256xf32> to vector<1x4x8x256xf32>
    tpu.vector_store %arg4[%c0_6, %c0_7, %c0_8, %c0_9], %12 {strides = array<i32>} : memref<1x4x8x256xf32, #tpu.memory_space<vmem>>, vector<1x4x8x256xf32>,
    return
  }
  func.func @transform_0(%arg0: i32) -> (i32, i32, i32) {
    %c0_i32 = arith.constant 0 : i32
    %c0_i32_0 = arith.constant 0 : i32
    %c0_i32_1 = arith.constant 0 : i32
    return %arg0, %c0_i32, %c0_i32_0 : i32, i32, i32
  }
  func.func @transform_1(%arg0: i32) -> (i32, i32) {
    %c0_i32 = arith.constant 0 : i32
    %c0_i32_0 = arith.constant 0 : i32
    %c0_i32_1 = arith.constant 0 : i32
    return %c0_i32, %c0_i32_0 : i32, i32
  }
  func.func @transform_2(%arg0: i32) -> (i32, i32) {
    %c0_i32 = arith.constant 0 : i32
    %c0_i32_0 = arith.constant 0 : i32
    %c0_i32_1 = arith.constant 0 : i32
    return %c0_i32, %c0_i32_0 : i32, i32
  }
  func.func @transform_3(%arg0: i32) -> (i32, i32, i32, i32) {
    %c0_i32 = arith.constant 0 : i32
    %c0_i32_0 = arith.constant 0 : i32
    %c0_i32_1 = arith.constant 0 : i32
    %c0_i32_2 = arith.constant 0 : i32
    return %arg0, %c0_i32, %c0_i32_0, %c0_i32_1 : i32, i32, i32, i32
  }
}

</mosaic_0001>

<bundles_post_ra>
// kernel: tpu_custom_call.1
= control target key start
LH: loop header
LB: loop body
LE: loop exit
PB: predicated region body
PF: predicated region fallthrough
CT: control target
= control target key end

     0   :  { %8 = vsyncpa [#allocation3], 0  ;;  %s603_s0 = inlined_call_operand.vmem [shape: f32[2,4,256], index: 0, kind: input, shape index: {}]   ;;  %s604_s1 = inlined_call_operand.vmem [shape: f32[8,4], index: 1, kind: input, shape index: {}]   ;;  %s605_s2 = inlined_call_operand.vmem [shape: f32[8,1], index: 2, kind: input, shape index: {}]   ;;  %s606_s3 = inlined_call_operand.hbm [shape: f32[2,4,8,256], index: 3, kind: output, shape index: {}]  }
   0x1   :  { %10 = vsyncpa [#allocation3 + $0x1], 0  ;;  %s494_s12 = smov 0   ;;  %s496_s13 = smov 0  }
   0x2   :  { %s498_s14 = smov 0   ;;  %s500_s15 = smov 0  }
   0x3 LB: > { %s515_s16 = sadd.s32 4294967295, %s467_s15   ;;  %s343_s17 = sadd.s32 4294967294, %s467_s15   ;;  %s467_s15 = sphi %s500_s15, %s612_s15   ;;  %s463_s14 = sphi %s498_s14, %s611_s14   ;;  %s459_s13 = sphi %s496_s13, %s610_s13   ;;  %s455_s12 = sphi %s494_s12, %s609_s12  }
   0x4   : > { %s519_s18 = sadd.s32 1, %s467_s15   ;;  %s91_s19 = sadd.s32 1, %s463_s14 }
   0x5   : > { %s88_s20 = ssub.s32 %s467_s15, %s519_s18  ;;  %p101_p0 = scmp.ne.s32.totalorder %s463_s14, %s459_s13 }
   0x6   : > { %p89_p1 = scmp.eq.s32.totalorder %s88_s20, 0  ;;  %p102_p2 = scmp.eq.s32.totalorder %s515_s16, 1 }
   0x7   : > { %p107_p3 = scmp.ne.s32.totalorder %s459_s13, %s455_s12  ;;  %p108_p4 = scmp.eq.s32.totalorder %s343_s17, 1 }
   0x8   : > { %s530_s21 = scalar_select %p89_p1, %s463_s14, %s91_s19  }
   0x9   : > { %p532_p5 = por %p102_p2, %p101_p0  ;;  %p536_p6 = por %p108_p4, %p107_p3 }
   0xa   : > { %p346_p7 = scmp.ge.s32.totalorder %s467_s15, 1  ;;  %p140_p8 = scmp.lt.s32.totalorder %s467_s15, 3 }
   0xc   : > { %p141_p9 = pnand %p346_p7, %p140_p8 }
   0xd   : > { %p164_p10 = scmp.lt.s32.totalorder (!%p141_p9), %s515_s16, 1  ;;  %v469_v0 = vmov (!%p141_p9), 0.0   ;;  %v470_v1 = vmov (!%p141_p9), 0   ;;  %v171_v2 = vld [vmem:[%s605_s2] sm:$0xff] (!%p141_p9)  ;;  %vm183_vm0 = vcmask (!%p141_p9), 1043456   ;;  %vm179_vm1 = vcmask (!%p141_p9), 31744  }
   0xe   : > { %144 = sbr.rel (%p141_p9) target bundleno = 262 (0x106), region = 32  ;;  %252 = vmatprep.mubr.f32.mxu0 (!%p141_p9), %v469_v0  ;;  %403 = vset.pattern.permute.xlu0 (!%p141_p9), %v470_v1  ;;  %v170_v5 = vld [vmem:[%s604_s1] sm:$0xff] (!%p141_p9)  ;;  %s161_s6 = sand.u32 (!%p141_p9), 1, %s459_s13  }
   0xf   : > { %174 = vperm.xlu0 (!%p141_p9), %403, %v171_v2   ;;  %s347_s7 = sshll.u32 (!%p141_p9), %s161_s6, 6  ;;  %s359_s8 = sshll.u32 (!%p141_p9), %s515_s16, 10 }
  0x10   : > { %s163_s9 = scalar_lea.vmem (!%p141_p9), [#allocation2], %s347_s7  ;;  %s558_s19 = scalar_lea.hbm (!%p141_p9), %s606_s3, %s359_s8 }
  0x11   : > { %s281_s10 = sshll.u32 (!%p141_p9), %s163_s9, 4  ;;  %s471_s24 = smov (!%p141_p9), [#allocation2]   ;;  %s560_s10 = int_to_ptr.vmem [resolvable:$true] %s281_s10 }
  0x12   : > { %s405_s20 = scalar_lea.vmem (!%p141_p9), %s560_s10, 1024  ;;  %s409_s25 = sshll.u32 (!%p141_p9), %s471_s24, 4  ;;  %s410_s25 = int_to_ptr.vmem [resolvable:$false] %s409_s25 }
  0x13   : > { %p406_p11 = scmp.ne.s32.totalorder (!%p141_p9), %s560_s10, %s405_s20  ;;  %p412_p0 = scmp.lt.s32.totalorder (!%p141_p9), %s560_s10, %s410_s25 }
  0x15   : > { %s165_s26 = scalar_select %p164_p10, %s515_s16, 1 }
  0x16   : > { %s562_s16 = scalar_lea.sflag [#allocation3], %s161_s6  ;;  %p407_p12 = pnand %p406_p11, %p532_p5 }
  0x17   : > { %s358_s27 = sshll.u32 %s165_s26, 3  ;;  %s411_s26 = scalar_lea.vmem %s410_s25, 2048 }
  0x18   : > { %s168_s30 = scalar_lea.vmem %s603_s0, %s358_s27  ;;  %p408_p13 = pneg %p407_p12 }
  0x19   : > { %v169_v3 = vld [vmem:[%s168_s30] sm:$0xff]  ;;  %p413_p1 = scmp.lt.s32.totalorder %s411_s26, %s405_s20 }
  0x1a   : > { %v178_v4 = vcombine.high %v169_v3, %v169_v3 }
  0x1b   : > { %p414_p2 = por %p413_p1, %p412_p0 }
  0x1c   : > { %350 = vmatprep.subr.msk.mxu0 %vm183_vm0, %v178_v4 }
  0x1d   : > { %351 = vmatpush1.msk.msra.mxu0 %vm183_vm0, %v169_v3  ;;  %p415_p3 = pnand %p414_p2, %p408_p13 }
  0x1e   : > { %352 = vmatmul.mubr.msk.f32.vlgmr.msra.gmra.mrb[0].mxu0 %vm179_vm1, %v170_v5 }
  0x8e   : > { %v175_v6 = vpop.permute.xlu0 %174 }
  0xf1   : > { %v254_v7 = vpop.f32.mrb[0].mxu0 }
  0xf2   : > { %v255_v8 = vadd.f32 %v254_v7, %v175_v6  ;;  %v256_v9 = vpop.f32.mrb[1].mxu0 }
  0xf3   : > { %v257_v10 = vadd.f32 %v256_v9, %v175_v6 }
  0xf4   : > { %259 = vst [vmem:[%s163_s9] sm:$0xff] %v255_v8  ;;  %261 = vst [vmem:[%s163_s9 + $0x10] sm:$0xff] %v255_v8 }
  0xf5   : > { %263 = vst [vmem:[%s163_s9 + $0x20] sm:$0xff] %v255_v8  ;;  %265 = vst [vmem:[%s163_s9 + $0x30] sm:$0xff] %v255_v8 }
  0xf6   : > { %260 = vst [vmem:[%s163_s9 + $0x8] sm:$0xff] %v257_v10  ;;  %262 = vst [vmem:[%s163_s9 + $0x18] sm:$0xff] %v257_v10 }
  0xf7   : > { %264 = vst [vmem:[%s163_s9 + $0x28] sm:$0xff] %v257_v10  ;;  %266 = vst [vmem:[%s163_s9 + $0x38] sm:$0xff] %v257_v10 }
  0xf8   : > { %418 = shalt.err (!%p415_p3)
}
  0xf9   : > { %s419_s27 = scalar_lea.hbm %s558_s19, 1024  ;;  %s423_s30 = scalar_lea.hbm %s606_s3, 2048 }
  0xfa   : > { %p420_p4 = scmp.ne.s32.totalorder %s558_s19, %s419_s27  ;;  %p424_p9 = scmp.lt.u32.totalorder %s558_s19, %s606_s3 }
  0xfb   : > { %p425_p10 = scmp.lt.u32.totalorder %s423_s30, %s419_s27  ;;  %p427_p12 = scmp.lt.u32.totalorder %s419_s27, %s558_s19 }
  0xfc   : > { %p421_p7 = pnand %p420_p4, %p532_p5 }
  0xfd   : > { %p426_p11 = por %p425_p10, %p424_p9 }
  0xfe   : > { %p422_p8 = pneg %p421_p7 }
  0xff   : > { %p428_p13 = por %p427_p12, %p426_p11 }
 0x101   : > { %p429_p0 = pnand %p428_p13, %p422_p8 }
 0x103   : > { %432 = shalt.err (!%p429_p0)
}
 0x104   : > { %s472_s6 = smov 256   ;;  %s473_s7 = smov 16  }
 0x105   : > { %360 = dma.vmem_to_hbm [thread:$0]  (%p532_p5), %s560_s10, 1024, %s558_s19, %s562_s16, %s472_s6, %s472_s6, %s473_s7  }
 0x106 PF: > { %p366_p1 = scmp.ge.s32.totalorder %s467_s15, 2  ;;  %s296_s8 = sand.u32 1, %s455_s12  }
 0x107   : > { %s297_s9 = scalar_lea.sflag [#allocation3], %s296_s8 }
 0x108   : > { %p363_p2 = pnand %p366_p1, %p536_p6 }
 0x10a   : > { %450 = dma.done.wait (!%p363_p2), %s297_s9, 1024  }
 0x10b   : > { %452 = vsyncadd (!%p363_p2), %s297_s9, 4294966272  ;;  %p13_p3 = scmp.ge.s32.totalorder %s519_s18, 4   ;;  %s609_s12 = smov %s459_s13 }
 0x10c   : > { %s610_s13 = smov %s463_s14  ;;  %s611_s14 = smov %s530_s21 }
 0x10d   : > { %s612_s15 = smov %s519_s18  ;;  %15 = sbr.rel (!%p13_p3) target bundleno = 3 (0x3), region = 67 }
 0x114   :  { %302 = vsyncpa [#allocation3], 1 }
 0x115   :  { %304 = vsyncpa [#allocation3 + $0x1], 1 }

</bundles_post_ra>
